<compile_context>
chip_gen: v7x
topology: tpu7x:2x2x1
jax: 0.10.0
libtpu: 0.0.40
codegen_flags: <defaults>
</compile_context>

<pallas_src>
from functools import partial

import jax
import jax.numpy as jnp
from jax.experimental import pallas as pl
from jax.experimental.pallas import tpu as pltpu


def _ln_bias_body(x_ref, gamma_ref, bias_ref, o_ref, eps):
    """Fused LayerNorm(x) * gamma + (beta [+ pos_emb]) for one (tile_l, D) tile."""
    x = x_ref[...].astype(jnp.float32)
    inv_d = 1.0 / x.shape[-1]
    # Single-pass moments: the (x - mean) temporary is formed *after* both
    # reductions, so no full-tile fp32 temporary must live across a reduction.
    mean = jnp.sum(x, axis=-1, keepdims=True) * inv_d
    mean_sq = jnp.sum(x * x, axis=-1, keepdims=True) * inv_d
    var = jnp.maximum(mean_sq - mean * mean, 0.0)
    inv = jax.lax.rsqrt(var + eps)
    y = (x - mean) * inv * gamma_ref[...].astype(jnp.float32) \
        + bias_ref[...].astype(jnp.float32)
    o_ref[...] = y.astype(o_ref.dtype)


def _proj_kernel(x_ref, gamma_ref, bias_ref, o_ref, *, eps):
    """No-eos variant: every grid step is an LN tile."""
    _ln_bias_body(x_ref, gamma_ref, bias_ref, o_ref, eps)


def _proj_eos_kernel(x_ref, gamma_ref, bias_ref, eos_ref, o_ref, *,
                     eps, n_x_blocks, e_pad):
    """LN tiles for l < n_x_blocks; the final seq block streams the eos rows."""
    l = pl.program_id(0)

    @pl.when(l < n_x_blocks)
    def _():
        _ln_bias_body(x_ref, gamma_ref, bias_ref, o_ref, eps)

    @pl.when(l >= n_x_blocks)
    def _():
        # Rows >= num_eos of this tail block lie beyond L+E and are masked on
        # writeback, so only the real eos rows ever reach HBM.
        o_ref[pl.ds(0, e_pad), :] = eos_ref[...].astype(o_ref.dtype)


def _choose_tile_l(L, D, itemsize, max_block_bytes=2 << 20, max_rows=1024):
    """Largest multiple-of-8 divisor of L within the row / byte budgets."""
    budget_rows = max(8, max_block_bytes // max(1, D * itemsize))
    target = min(L, max_rows, budget_rows)
    if L <= target:
        return L
    t = (target // 8) * 8
    while t >= 8:
        if L % t == 0:
            return t
        t -= 8
    return L  # fallback for odd/tiny L: single tile


def fold_ln_bias(ln_beta, pos_emb, dtype):
    """Pre-fold LayerNorm beta and positional embedding into one bias map.

    Parameter-only: compute ONCE at parameter-load time, not per forward call.
    Returns (1, 1, D) when pos_emb is None (broadcast in-kernel, no (L, D)
    materialization), else (1, L, D) in the activation dtype.
    """
    D = ln_beta.shape[-1]
    if pos_emb is None:
        return ln_beta.reshape(1, 1, D).astype(dtype)
    folded = (ln_beta.reshape(1, 1, D).astype(jnp.float32)
              + pos_emb.astype(jnp.float32))
    return folded.astype(dtype)


def projector_forward(x, ln_gamma, bias, eos_tokens, *, tile_l=None, eps=1e-5):
    """x: (B, L, D); bias: pre-folded (1, 1, D) or (1, L, D) from fold_ln_bias.

    Returns (B, L + num_eos, D).
    """
    B, L, D = x.shape
    itemsize = jnp.dtype(x.dtype).itemsize

    if tile_l is None:
        tile_l = _choose_tile_l(L, D, itemsize)
        # v7x megacore: with a single batch, keep the seq axis shardable.
        if B == 1 and tile_l == L and L >= 16 and L % 16 == 0:
            tile_l = L // 2
    assert L % tile_l == 0, (L, tile_l)
    nlb = L // tile_l

    E = 0 if eos_tokens is None else eos_tokens.shape[1]
    gamma2d = ln_gamma.reshape(1, D)
    gamma_spec = pl.BlockSpec((1, D), lambda l, b: (0, 0))

    per_token_bias = bias.shape[1] != 1
    assert bias.shape[1] in (1, L), bias.shape

    if E > 0:
        assert tile_l % 8 == 0, "seq tile must be a multiple of 8 when appending eos"
        e_pad = ((E + 7) // 8) * 8
        assert e_pad <= tile_l, "num_eos_tokens must fit in one seq tile"
        eos_pad = jnp.zeros((1, e_pad, D), dtype=x.dtype)
        eos_pad = eos_pad.at[:, :E, :].set(
            eos_tokens.reshape(1, E, D).astype(x.dtype))

        # eos step: pin x's block index to the immediately preceding grid
        # step's index (seq clamped to nlb-1, batch pinned to B-1) so Pallas
        # revisit detection skips the DMA for the unused tile.
        x_spec = pl.BlockSpec(
            (None, tile_l, D),
            lambda l, b: (jnp.where(l < nlb, b, B - 1),
                          jnp.minimum(l, nlb - 1), 0))
        if per_token_bias:
            bias_spec = pl.BlockSpec(
                (None, tile_l, D),
                lambda l, b: (0, jnp.minimum(l, nlb - 1), 0))
        else:
            bias_spec = pl.BlockSpec((None, 1, D), lambda l, b: (0, 0, 0))
        eos_spec = pl.BlockSpec((None, e_pad, D), lambda l, b: (0, 0, 0))

        kernel = partial(_proj_eos_kernel, eps=eps, n_x_blocks=nlb, e_pad=e_pad)
        in_specs = [x_spec, gamma_spec, bias_spec, eos_spec]
        args = (x, gamma2d, bias, eos_pad)
        n_seq_blocks = nlb + 1
    else:
        x_spec = pl.BlockSpec((None, tile_l, D), lambda l, b: (b, l, 0))
        if per_token_bias:
            bias_spec = pl.BlockSpec((None, tile_l, D), lambda l, b: (0, l, 0))
        else:
            bias_spec = pl.BlockSpec((None, 1, D), lambda l, b: (0, 0, 0))
        kernel = partial(_proj_kernel, eps=eps)
        in_specs = [x_spec, gamma_spec, bias_spec]
        args = (x, gamma2d, bias)
        n_seq_blocks = nlb

    y = pl.pallas_call(
        kernel,
        out_shape=jax.ShapeDtypeStruct((B, L + E, D), x.dtype),
        grid_spec=pltpu.PrefetchScalarGridSpec(
            num_scalar_prefetch=0,
            # seq outer, batch inner: the batch-shared bias block index is
            # constant across the inner batch steps -> fetched once per tile.
            grid=(n_seq_blocks, B),
            in_specs=in_specs,
            out_specs=pl.BlockSpec((None, tile_l, D), lambda l, b: (b, l, 0)),
        ),
        compiler_params=pltpu.CompilerParams(
            dimension_semantics=("parallel", "parallel"),
            # 3 double-buffered 2 MiB streams (x, bias, out) + small eos/gamma:
            # 32 MiB gives v5e headroom without approaching v7x's 64 MiB VMEM.
            vmem_limit_bytes=32 << 20),
    )(*args)

    # _forward(): identity (abstract in the base class).
    return y


def _reference(x, ln_gamma, ln_beta, pos_emb, eos_tokens, eps=1e-5):
    mean = jnp.mean(x, axis=-1, keepdims=True)
    var = jnp.mean((x - mean) ** 2, axis=-1, keepdims=True)
    xn = (x - mean) / jnp.sqrt(var + eps)
    y = xn * ln_gamma + ln_beta
    if pos_emb is not None:
        y = y + pos_emb
    if eos_tokens is not None:
        B = x.shape[0]
        eos = jnp.broadcast_to(eos_tokens, (B,) + eos_tokens.shape[1:])
        y = jnp.concatenate([y, eos], axis=1)
    return y


if __name__ == "__main__":
    # Small config consistent with the module:
    #   num_input_tokens (L) = 16, encoder_hidden_size = output_hidden_size = 128,
    #   num_eos_tokens = 2, prenorm = True, pos_emb = True, batch = 2.
    B, L, D = 2, 16, 128
    NUM_EOS = 2
    INIT_RANGE = 0.02

    key = jax.random.PRNGKey(0)
    k_x, k_pos, k_eos = jax.random.split(key, 3)

    x = jax.random.normal(k_x, (B, L, D), dtype=jnp.float32)

    ln_gamma = jnp.ones((D,), dtype=jnp.float32)          # LayerNorm weight
    ln_beta = jnp.zeros((D,), dtype=jnp.float32)          # LayerNorm bias
    pos_emb = 0.02 * jax.random.normal(k_pos, (1, L, D), dtype=jnp.float32)
    eos_tokens = INIT_RANGE * jax.random.normal(k_eos, (1, NUM_EOS, D),
                                                dtype=jnp.float32)

    # Parameter-only pre-fold: computed once (load time), not per forward call.
    bias = fold_ln_bias(ln_beta, pos_emb, x.dtype)

    fwd = jax.jit(projector_forward)
    out = jax.block_until_ready(fwd(x, ln_gamma, bias, eos_tokens))

    ref = _reference(x, ln_gamma, ln_beta, pos_emb, eos_tokens)
    assert out.shape == (B, L + NUM_EOS, D), out.shape
    assert jnp.allclose(out, ref, atol=3e-5, rtol=3e-5), float(
        jnp.max(jnp.abs(out - ref)))

    print("KERNEL_OK")
</pallas_src>

<mosaic_0001>
module attributes {stable_mosaic.version = 11 : i64} {
  func.func @_proj_eos_kernel(%arg0: i32, %arg1: i32, %arg2: memref<1x16x128xf32, #tpu.memory_space<vmem>>, %arg3: memref<1x128xf32, #tpu.memory_space<vmem>>, %arg4: memref<1x16x128xf32, #tpu.memory_space<vmem>>, %arg5: memref<1x8x128xf32, #tpu.memory_space<vmem>>, %arg6: memref<1x16x128xf32, #tpu.memory_space<vmem>>) attributes {dimension_semantics = [#tpu.dimension_semantics<parallel>, #tpu.dimension_semantics<parallel>], iteration_bounds = array<i64: 2, 2>, scalar_prefetch = 0 : i64, scratch_operands = 0 : i64, tpu.core_type = #tpu.core_type<tc>, window_params = [{transform_indices = @transform_0, window_bounds = array<i64: 1, 16, 128>}, {pipeline_mode = #tpu.pipeline_mode<synchronous>, transform_indices = @transform_1, window_bounds = array<i64: 1, 128>}, {transform_indices = @transform_2, window_bounds = array<i64: 1, 16, 128>}, {pipeline_mode = #tpu.pipeline_mode<synchronous>, transform_indices = @transform_3, window_bounds = array<i64: 1, 8, 128>}, {transform_indices = @transform_4, window_bounds = array<i64: 1, 16, 128>}]} {
    %c1_i32 = arith.constant 1 : i32
    %0 = arith.cmpi slt, %arg0, %c1_i32 : i32
    %1 = arith.extui %0 : i1 to i32
    %c0_i32 = arith.constant 0 : i32
    %2 = arith.cmpi ne, %1, %c0_i32 : i32
    scf.if %2 {
      %c0 = arith.constant 0 : index
      %c0_2 = arith.constant 0 : index
      %c0_3 = arith.constant 0 : index
      %6 = vector.load %arg2[%c0, %c0_2, %c0_3] : memref<1x16x128xf32, #tpu.memory_space<vmem>>, vector<1x16x128xf32>
      %7 = vector.shape_cast %6 : vector<1x16x128xf32> to vector<16x128xf32>
      %cst = arith.constant dense<0.000000e+00> : vector<16xf32>
      %8 = vector.multi_reduction <add>, %7, %cst [1] : vector<16x128xf32> to vector<16xf32>
      %9 = vector.shape_cast %8 : vector<16xf32> to vector<16x1xf32>
      %cst_4 = arith.constant 7.812500e-03 : f32
      %10 = vector.broadcast %cst_4 : f32 to vector<16x1xf32>
      %11 = arith.mulf %9, %10 : vector<16x1xf32>
      %12 = arith.mulf %7, %7 : vector<16x128xf32>
      %cst_5 = arith.constant dense<0.000000e+00> : vector<16xf32>
      %13 = vector.multi_reduction <add>, %12, %cst_5 [1] : vector<16x128xf32> to vector<16xf32>
      %14 = vector.shape_cast %13 : vector<16xf32> to vector<16x1xf32>
      %cst_6 = arith.constant 7.812500e-03 : f32
      %15 = vector.broadcast %cst_6 : f32 to vector<16x1xf32>
      %16 = arith.mulf %14, %15 : vector<16x1xf32>
      %17 = arith.mulf %11, %11 : vector<16x1xf32>
      %18 = arith.subf %16, %17 : vector<16x1xf32>
      %cst_7 = arith.constant 0.000000e+00 : f32
      %19 = vector.broadcast %cst_7 : f32 to vector<16x1xf32>
      %20 = arith.maximumf %18, %19 : vector<16x1xf32>
      %cst_8 = arith.constant 9.99999974E-6 : f32
      %21 = vector.broadcast %cst_8 : f32 to vector<16x1xf32>
      %22 = arith.addf %20, %21 : vector<16x1xf32>
      %23 = math.rsqrt %22 : vector<16x1xf32>
      %24 = vector.broadcast %11 : vector<16x1xf32> to vector<16x128xf32>
      %25 = arith.subf %7, %24 : vector<16x128xf32>
      %26 = vector.broadcast %23 : vector<16x1xf32> to vector<16x128xf32>
      %27 = arith.mulf %25, %26 : vector<16x128xf32>
      %c0_9 = arith.constant 0 : index
      %c0_10 = arith.constant 0 : index
      %28 = vector.load %arg3[%c0_9, %c0_10] : memref<1x128xf32, #tpu.memory_space<vmem>>, vector<1x128xf32>
      %29 = vector.broadcast %28 : vector<1x128xf32> to vector<16x128xf32>
      %30 = arith.mulf %27, %29 : vector<16x128xf32>
      %c0_11 = arith.constant 0 : index
      %c0_12 = arith.constant 0 : index
      %c0_13 = arith.constant 0 : index
      %31 = vector.load %arg4[%c0_11, %c0_12, %c0_13] : memref<1x16x128xf32, #tpu.memory_space<vmem>>, vector<1x16x128xf32>
      %32 = vector.shape_cast %31 : vector<1x16x128xf32> to vector<16x128xf32>
      %33 = arith.addf %30, %32 : vector<16x128xf32>
      %c0_14 = arith.constant 0 : index
      %c0_15 = arith.constant 0 : index
      %c0_16 = arith.constant 0 : index
      %34 = vector.load %arg6[%c0_14, %c0_15, %c0_16] : memref<1x16x128xf32, #tpu.memory_space<vmem>>, vector<1x16x128xf32>
      %35 = vector.shape_cast %34 : vector<1x16x128xf32> to vector<16x128xf32>
      %36 = vector.shape_cast %33 : vector<16x128xf32> to vector<1x16x128xf32>
      tpu.vector_store %arg6[%c0_14, %c0_15, %c0_16], %36 {strides = array<i32>} : memref<1x16x128xf32, #tpu.memory_space<vmem>>, vector<1x16x128xf32>,
    } else {
    }
    %c1_i32_0 = arith.constant 1 : i32
    %3 = arith.cmpi sge, %arg0, %c1_i32_0 : i32
    %4 = arith.extui %3 : i1 to i32
    %c0_i32_1 = arith.constant 0 : i32
    %5 = arith.cmpi ne, %4, %c0_i32_1 : i32
    scf.if %5 {
      %c0 = arith.constant 0 : index
      %c0_2 = arith.constant 0 : index
      %c0_3 = arith.constant 0 : index
      %6 = vector.load %arg5[%c0, %c0_2, %c0_3] : memref<1x8x128xf32, #tpu.memory_space<vmem>>, vector<1x8x128xf32>
      %7 = vector.shape_cast %6 : vector<1x8x128xf32> to vector<8x128xf32>
      %c0_4 = arith.constant 0 : index
      %c0_5 = arith.constant 0 : index
      %c0_6 = arith.constant 0 : index
      %8 = vector.load %arg6[%c0_4, %c0_5, %c0_6] : memref<1x16x128xf32, #tpu.memory_space<vmem>>, vector<1x8x128xf32>
      %9 = vector.shape_cast %8 : vector<1x8x128xf32> to vector<8x128xf32>
      %10 = vector.shape_cast %7 : vector<8x128xf32> to vector<1x8x128xf32>
      tpu.vector_store %arg6[%c0_4, %c0_5, %c0_6], %10 {strides = array<i32>} : memref<1x16x128xf32, #tpu.memory_space<vmem>>, vector<1x8x128xf32>,
    } else {
    }
    return
  }
  func.func @transform_0(%arg0: i32, %arg1: i32) -> (i32, i32, i32) {
    %c1_i32 = arith.constant 1 : i32
    %0 = arith.cmpi slt, %arg0, %c1_i32 : i32
    %c1_i32_0 = arith.constant 1 : i32
    %1 = arith.select %0, %arg1, %c1_i32_0 : i32
    %c0_i32 = arith.constant 0 : i32
    %2 = arith.minsi %arg0, %c0_i32 : i32
    %c0_i32_1 = arith.constant 0 : i32
    %c0_i32_2 = arith.constant 0 : i32
    return %1, %2, %c0_i32_1 : i32, i32, i32
  }
  func.func @transform_1(%arg0: i32, %arg1: i32) -> (i32, i32) {
    %c0_i32 = arith.constant 0 : i32
    %c0_i32_0 = arith.constant 0 : i32
    %c0_i32_1 = arith.constant 0 : i32
    return %c0_i32, %c0_i32_0 : i32, i32
  }
  func.func @transform_2(%arg0: i32, %arg1: i32) -> (i32, i32, i32) {
    %c0_i32 = arith.constant 0 : i32
    %0 = arith.minsi %arg0, %c0_i32 : i32
    %c0_i32_0 = arith.constant 0 : i32
    %c0_i32_1 = arith.constant 0 : i32
    %c0_i32_2 = arith.constant 0 : i32
    return %c0_i32_0, %0, %c0_i32_1 : i32, i32, i32
  }
  func.func @transform_3(%arg0: i32, %arg1: i32) -> (i32, i32, i32) {
    %c0_i32 = arith.constant 0 : i32
    %c0_i32_0 = arith.constant 0 : i32
    %c0_i32_1 = arith.constant 0 : i32
    %c0_i32_2 = arith.constant 0 : i32
    return %c0_i32, %c0_i32_0, %c0_i32_1 : i32, i32, i32
  }
  func.func @transform_4(%arg0: i32, %arg1: i32) -> (i32, i32, i32) {
    %c0_i32 = arith.constant 0 : i32
    %c0_i32_0 = arith.constant 0 : i32
    return %arg1, %arg0, %c0_i32 : i32, i32, i32
  }
}

</mosaic_0001>

<bundles_post_ra>
// kernel: projector_forward.1
= control target key start
LH: loop header
LB: loop body
LE: loop exit
PB: predicated region body
PF: predicated region fallthrough
CT: control target
= control target key end

     0   :  { %9 = vsyncpa [#allocation3], 0  ;;  %s1234_s0 = inlined_call_operand.hbm [shape: f32[2,16,128], index: 0, kind: input, shape index: {}]   ;;  %s1235_s1 = inlined_call_operand.vmem [shape: f32[1,128], index: 1, kind: input, shape index: {}]   ;;  %s1236_s2 = inlined_call_operand.vmem [shape: f32[1,16,128], index: 2, kind: input, shape index: {}]   ;;  %s1237_s3 = inlined_call_operand.vmem [shape: f32[1,8,128], index: 3, kind: input, shape index: {}]   ;;  %s1238_s4 = inlined_call_operand.vmem [shape: f32[2,18,128], index: 4, kind: output, shape index: {}]  }
   0x1   :  { %11 = vsyncpa [#allocation3 + $0x1], 0  ;;  %s1004_s15 = smov 0   ;;  %s1006_s16 = smov 0  }
   0x2   :  { %s1008_s17 = smov 0   ;;  %s1010_s18 = smov 0  }
   0x3   :  { %s1012_s19 = smov 0   ;;  %s1014_s20 = smov 0  }
   0x4   :  { %s1016_s21 = smov 0   ;;  %s1018_s22 = smov 0  }
   0x5   :  { %s1020_s23 = smov 0   ;;  %s1022_s24 = smov 0  }
   0x6 LB: > { %s604_s25 = sadd.s32 4294967295, %s942_s24   ;;  %s26_s26 = sadd.s32 1, %s934_s22  ;;  %s942_s24 = sphi %s1022_s24, %s17_s24   ;;  %s938_s23 = sphi %s1020_s23, %s1256_s23   ;;  %s934_s22 = sphi %s1018_s22, %s1255_s22   ;;  %s930_s21 = sphi %s1016_s21, %s1254_s21   ;;  %s926_s20 = sphi %s1014_s20, %s1253_s20   ;;  %s922_s19 = sphi %s1012_s19, %s1252_s19   ;;  %s918_s18 = sphi %s1010_s18, %s1251_s18   ;;  %s914_s17 = sphi %s1008_s17, %s1250_s17   ;;  %s910_s16 = sphi %s1006_s16, %s1249_s16   ;;  %s906_s15 = sphi %s1004_s15, %s1248_s15  }
   0x7   : > { %p27_p0 = scmp.ge.s32.totalorder %s26_s26, 2  ;;  %s29_s27 = sadd.s32 1, %s938_s23 }
   0x8   : > { %p33_p1 = scmp.lt.s32.totalorder %s938_s23, 1  ;;  %s46_s29 = sadd.s32 1, %s922_s19 }
   0x9   : > { %s1258_s26 = smov (%p27_p0, %s26_s26), 0  ;;  %s1260_s27 = smov (!%p27_p0, %s29_s27), %s938_s23 }
   0xa   : > { %s1060_s28 = scalar_select %p33_p1, %s934_s22, 1 }
   0xb   : > { %p31_p2 = scmp.ge.s32.totalorder %s1260_s27, 2  ;;  %p53_p3 = scmp.ne.s32.totalorder %s922_s19, %s918_s18 }
   0xc   : > { %p54_p4 = scmp.eq.s32.totalorder %s942_s24, 0  ;;  %p59_p7 = scmp.ne.s32.totalorder %s918_s18, %s914_s17 }
   0xd   : > { %s1262_s27 = smov (%p31_p2, %s1260_s27), 0  ;;  %p60_p8 = scmp.eq.s32.totalorder %s604_s25, 0 }
   0xe   : > { %1240 = sst [smem:[#allocation6_spill]] %s1262_s27  ;;  %p37_p5 = scmp.lt.s32.totalorder %s1262_s27, 1 }
   0xf   : > { %p1069_p6 = por %p54_p4, %p53_p3  ;;  %s141_s7 = ssub.s32 %s934_s22, %s1258_s26 }
  0x10   : > { %s38_s5 = scalar_select %p37_p5, %s1258_s26, 1 }
  0x11   : > { %p1078_p9 = por %p60_p8, %p59_p7  ;;  %s142_s9 = ssub.s32 %s938_s23, %s1262_s27 }
  0x12   : > { %s41_s6 = ssub.s32 %s1060_s28, %s38_s5  ;;  %s143_s10 = sor.u32 %s142_s9, %s141_s7 }
  0x13   : > { %p44_p10 = scmp.eq.s32.totalorder %s41_s6, 0  ;;  %s146_s11 = sadd.s32 1, %s910_s16 }
  0x14   : > { %p144_p11 = scmp.eq.s32.totalorder %s143_s10, 0  ;;  %p156_p12 = scmp.ne.s32.totalorder %s910_s16, %s906_s15 }
  0x15   : > { %s1086_s12 = scalar_select %p44_p10, %s922_s19, %s46_s29  }
  0x16   : > { %p157_p13 = scmp.eq.s32.totalorder %s604_s25, 3  ;;  %p646_p1 = scmp.lt.s32.totalorder %s942_s24, 4 }
  0x17   : > { %s1091_s13 = scalar_select %p144_p11, %s910_s16, %s146_s11  }
  0x18   : > { %p1093_p0 = por %p157_p13, %p156_p12  ;;  %s189_s17 = sand.u32 1, %s922_s19  }
  0x19   : > { %s608_s5 = sshll.u32 %s189_s17, 4  ;;  %s903_s7 = sshll.u32 %s1060_s28, 8 }
  0x1a   : > { %s1243_s14 = scalar_select %p1093_p0, 1, 0 }
  0x1b   : > { %s193_s6 = scalar_lea.vmem [#allocation2], %s608_s5  ;;  %s1105_s10 = scalar_lea.hbm %s1234_s0, %s903_s7 }
  0x1c   : > { %s206_s27 = sshll.u32 %s193_s6, 4  ;;  %p1109_p2 = pnand %p646_p1, %p1069_p6  ;;  %s1100_s27 = int_to_ptr.vmem [resolvable:$true] %s206_s27 }
  0x1d   : > { %s1114_s28 = scalar_lea.sflag [#allocation3], %s189_s17  ;;  %s797_s11 = scalar_lea.hbm %s1105_s10, 256 }
  0x1e   : > { %p798_p4 = scmp.ne.s32.totalorder %s1105_s10, %s797_s11  ;;  %p799_p5 = pneg %p1109_p2 }
  0x1f   : > { %s802_s6 = scalar_lea.hbm %s1234_s0, 512  ;;  %p803_p6 = scmp.lt.u32.totalorder %s1105_s10, %s1234_s0 }
  0x20   : > { %p800_p7 = pnand %p799_p5, %p798_p4  ;;  %p804_p10 = scmp.lt.u32.totalorder %s802_s6, %s797_s11 }
  0x21   : > { %p806_p12 = scmp.lt.u32.totalorder %s797_s11, %s1105_s10 }
  0x22   : > { %p801_p8 = pneg %p800_p7  ;;  %p805_p11 = por %p804_p10, %p803_p6 }
  0x24   : > { %p807_p13 = por %p806_p12, %p805_p11 }
  0x26   : > { %p808_p1 = pnand %p807_p13, %p801_p8 }
  0x28   : > { %811 = shalt.err (!%p808_p1)
}
  0x29   : > { %s812_s17 = scalar_lea.vmem %s1100_s27, 256  ;;  %s976_s29 = smov [#allocation2]  }
  0x2a   : > { %p813_p4 = scmp.ne.s32.totalorder %s1100_s27, %s812_s17  ;;  %s817_s30 = sshll.u32 %s976_s29, 4  ;;  %s818_s30 = int_to_ptr.vmem [resolvable:$false] %s817_s30 }
  0x2b   : > { %s819_s5 = scalar_lea.vmem %s818_s30, 512  ;;  %p820_p0 = scmp.lt.s32.totalorder %s1100_s27, %s818_s30 }
  0x2c   : > { %p815_p7 = pnand %p813_p4, %p799_p5  ;;  %p821_p6 = scmp.lt.s32.totalorder %s819_s5, %s812_s17 }
  0x2e   : > { %p816_p3 = pneg %p815_p7  ;;  %p822_p10 = por %p821_p6, %p820_p0 }
  0x30   : > { %p823_p11 = pnand %p822_p10, %p816_p3 }
  0x32   : > { %826 = shalt.err (!%p823_p11)
}
  0x33   : > { %s977_s11 = smov 128   ;;  %s978_s6 = smov 8  }
  0x34   : > { %645 = dma.hbm_to_vmem [thread:$0]  (!%p1109_p2), %s1105_s10, 256, %s1100_s27, %s1114_s28, %s977_s11, %s977_s11, %s978_s6  }
  0x35   : > { %p227_p5 = scmp.lt.s32.totalorder %s942_s24, 5  ;;  %p1245_p8 = scmp.ge.s32.totalorder %s942_s24, 1 }
  0x37   : > { %p228_p12 = pnand %p1245_p8, %p227_p5 }
  0x38   : > { %s233_s7 = sand.u32 (!%p228_p12), 1, %s918_s18  }
  0x39   : > { %231 = sbr.rel (%p228_p12) target bundleno = 310 (0x136), region = 36  ;;  %s613_s9 = sshll.u32 (!%p228_p12), %s233_s7, 4 }
  0x3a   : > { %s234_s17 = scalar_lea.sflag (!%p228_p12), [#allocation3], %s233_s7  ;;  %s237_s29 = scalar_lea.vmem (!%p228_p12), [#allocation2], %s613_s9 }
  0x40   : > { %900 = dma.done.wait (%p1078_p9), %s234_s17, 256  }
  0x41   : > { %902 = vsyncadd (%p1078_p9), %s234_s17, 4294967040  ;;  %s265_s25 = sand.u32 1, %s906_s15   ;;  %p273_p0 = scmp.lt.s32.totalorder %s930_s21, 0 }
  0x42   : > { %s614_s27 = sshll.u32 %s265_s25, 4  ;;  %p617_p9 = scmp.ge.s32.totalorder %s930_s21, 1 }
  0x43   : > { %s274_s10 = scalar_select %p273_p0, %s930_s21, 0 }
  0x44   : > { %s1158_s7 = scalar_lea.vmem [#allocation4], %s614_s27   ;;  %291 = sbr.rel (%p617_p9) target bundleno = 243 (0xf3), region = 44  ;;  %v292_v0 = vld [vmem:[%s237_s29] sm:$0xff] (!%p617_p9)  ;;  %v293_v1 = vld [vmem:[%s237_s29 + $0x8] sm:$0xff] (!%p617_p9) }
  0x45   : > { %s615_s28 = sshll.u32 %s274_s10, 1  ;;  %294 = vadd.xlane.f32.xlu0 (!%p617_p9), %v292_v0  ;;  %v300_v2 = vmul.f32 (!%p617_p9), %v292_v0, %v292_v0  ;;  %v301_v3 = vmul.f32 (!%p617_p9), %v293_v1, %v293_v1  ;;  %v618_v22 = vld [vmem:[%s1235_s1] ss:$0 sm:$0xff] (!%p617_p9) }
  0x46   : > { %p276_p2 = scmp.lt.s32.totalorder %s615_s28, 1 }
  0x47   : > { %302 = vadd.xlane.f32.xlu1 (!%p617_p9), %v300_v2 }
  0x48   : > { %s1264_s28 = smov (!%p276_p2, %s615_s28), 1 }
  0x49   : > { %s616_s30 = sshll.u32 %s1264_s28, 3  ;;  %296 = vadd.xlane.f32.xlu0 (!%p617_p9), %v293_v1 }
  0x4a   : > { %s1156_s6 = scalar_lea.vmem %s1236_s2, %s616_s30 }
  0x4b   : > { %304 = vadd.xlane.f32.xlu1 %v301_v3  ;;  %v331_v24 = vld [vmem:[%s1156_s6] sm:$0xff]  ;;  %v332_v30 = vld [vmem:[%s1156_s6 + $0x8] sm:$0xff] }
  0xd2   : > { %v295_v4 = vpop.xlane.xlu0 %294 }
  0xd3   : > { %v298_v5 = vmul.f32 0.0078125, %v295_v4 }
  0xd4   : > { %v303_v6 = vpop.xlane.xlu1 %302 }
  0xd5   : > { %v308_v7 = vmul.f32 %v298_v5, %v298_v5  ;;  %v306_v8 = vmul.f32 0.0078125, %v303_v6  ;;  %v318_v20 = vsub.f32 %v292_v0, %v298_v5 }
  0xd6   : > { %v297_v9 = vpop.xlane.xlu0 %296 }
  0xd7   : > { %v310_v10 = vsub.f32 %v306_v8, %v308_v7  ;;  %v299_v11 = vmul.f32 0.0078125, %v297_v9 }
  0xd8   : > { %v305_v12 = vpop.xlane.xlu1 %304 }
  0xd9   : > { %v312_v13 = vmax.f32 %v310_v10, 0.0  ;;  %v309_v14 = vmul.f32 %v299_v11, %v299_v11  ;;  %v307_v15 = vmul.f32 0.0078125, %v305_v12  ;;  %v319_v26 = vsub.f32 %v293_v1, %v299_v11 }
  0xdb   : > { %v314_v16 = vadd.f32 1e-05, %v312_v13  ;;  %v311_v17 = vsub.f32 %v307_v15, %v309_v14 }
  0xdd   : > { %793 = vrsqrt.f32 %v314_v16  ;;  %v313_v18 = vmax.f32 %v311_v17, 0.0 }
  0xdf   : > { %v315_v19 = vadd.f32 1e-05, %v313_v18 }
  0xe1   : > { %795 = vrsqrt.f32 %v315_v19 }
  0xe7   : > { %v794_v21 = vpop.eup %793 }
  0xe8   : > { %v320_v23 = vmul.f32 %v794_v21, %v318_v20 }
  0xea   : > { %v329_v25 = vmul.f32 %v618_v22, %v320_v23 }
  0xeb   : > { %v796_v27 = vpop.eup %795 }
  0xec   : > { %v333_v28 = vadd.f32 %v331_v24, %v329_v25  ;;  %v321_v29 = vmul.f32 %v796_v27, %v319_v26 }
  0xee   : > { %335 = vst [vmem:[%s1158_s7] sm:$0xff] %v333_v28  ;;  %v330_v31 = vmul.f32 %v618_v22, %v321_v29 }
  0xf0   : > { %v334_v32 = vadd.f32 %v332_v30, %v330_v31 }
  0xf2   : > { %336 = vst [vmem:[%s1158_s7 + $0x8] sm:$0xff] %v334_v32 }
  0xf3 PF: > { %p619_p3 = scmp.lt.s32.totalorder %s930_s21, 1 }
  0xf4   : > { %v341_v33 = vld [vmem:[%s1237_s3] sm:$0xff] (!%p619_p3) }
  0xf5   : > { %340 = sbr.rel (%p619_p3) target bundleno = 252 (0xfc), region = 48  ;;  %342 = vst [vmem:[%s1158_s7] sm:$0xff] (!%p619_p3), %v341_v33 }
  0xfc PF: > { %p1246_p13 = scmp.ne.s32.totalorder %s1243_s14, 0 }
  0xfd   : > { %s621_s29 = sshll.u32 (%p1246_p13), %s930_s21, 1  ;;  %s639_s25 = smul.u32 (%p1246_p13), 3, %s926_s20 }
  0xfe   : > { %349 = sbr.rel (!%p1246_p13) target bundleno = 310 (0x136), region = 52  ;;  %s351_s27 = ssub.s32 (%p1246_p13), 3, %s621_s29 }
  0xff   : > { %p352_p1 = scmp.lt.s32.totalorder (%p1246_p13), %s351_s27, 2  ;;  %s357_s10 = sadd.s32 (%p1246_p13), %s639_s25, %s621_s29 }
 0x100   : > { %s624_s28 = sshll.u32 (%p1246_p13), %s357_s10, 3 }
 0x101   : > { %s1182_s11 = scalar_lea.vmem (%p1246_p13), %s1238_s4, %s624_s28  }
 0x105   : > { %s1266_s27 = smov (!%p352_p1, %s351_s27), 2 }
 0x106   : > { %s622_s6 = sshll.u32 %s1266_s27, 7 }
 0x107   : > { %p625_p4 = scmp.eq.s32.totalorder %s622_s6, 0 }
 0x108   : > { %s1186_s14 = sshrl.u32 (!%p625_p4), %s1266_s27, 1 }
 0x109   : > { %362 = sbr.rel (%p625_p4) target bundleno = 310 (0x136), region = 56  ;;  %p626_p7 = scmp.le.s32.totalorder (!%p625_p4), %s1186_s14, 0 }
 0x110   : > { %540 = sbr.rel (%p626_p7) target bundleno = 289 (0x121), region = 141  ;;  %s944_s20 = smov (!%p626_p7), %s1182_s11  }
 0x111   : > { %s948_s21 = smov (!%p626_p7), %s1158_s7   ;;  %s952_s15 = smov (!%p626_p7), 0  }
 0x112   : > { %s956_s8 = smov (!%p626_p7), 0  }
 0x117 LB: >> { %v426_v34 = vld [vmem:[%s950_s21] sm:$0xff]  ;;  %v428_v35 = vld [vmem:[%s950_s21 + $0x8] sm:$0xff]  ;;  %s430_s9 = sadd.s32 1, %s954_s15  ;;  %s420_s8 = sadd.s32 1, %s958_s8   ;;  %s958_s8 = sphi %s956_s8, %s420_s8   ;;  %s954_s15 = sphi %s952_s15, %s953_s15   ;;  %s950_s21 = sphi %s948_s21, %s435_s21   ;;  %s946_s20 = sphi %s944_s20, %s436_s20  }
 0x118   : >> { %427 = vst [vmem:[%s946_s20] sm:$0xff] %v426_v34  ;;  %429 = vst [vmem:[%s946_s20 + $0x8] sm:$0xff] %v428_v35  ;;  %p431_p6 = scmp.ge.s32.totalorder %s430_s9, %s1186_s14  ;;  %p419_p10 = scmp.ge.s32.totalorder %s420_s8, %s1186_s14 }
 0x11a   : >> { %s1268_s9 = smov (%p431_p6, %s430_s9), 0  ;;  %422 = sbr.rel (!%p419_p10) target bundleno = 279 (0x117), region = 147 }
 0x11b   : >> { %s627_s17 = sshll.u32 %s1268_s9, 4  ;;  %s953_s15 = smov %s1268_s9  }
 0x11c   : >> { %s435_s21 = scalar_lea.vmem %s1158_s7, %s627_s17 [#allocation4]   ;;  %s436_s20 = scalar_lea.vmem %s1182_s11, %s627_s17  }
 0x121 PF: > { %s1196_s29 = sand.u32 1, %s1266_s27   ;;  %s637_s25 = sshll.u32 %s1186_s14, 4 }
 0x122   : > { %s441_s10 = scalar_lea.vmem %s1158_s7, %s637_s25 [#allocation4]   ;;  %s443_s28 = scalar_lea.vmem %s1182_s11, %s637_s25  }
 0x123   : > { %p632_p11 = scmp.le.s32.totalorder %s1196_s29, 0 }
 0x124   : > { %s960_s30 = smov (!%p632_p11), %s443_s28   ;;  %s964_s5 = smov (!%p632_p11), %s441_s10  }
 0x125   : > { %554 = sbr.rel (%p632_p11) target bundleno = 310 (0x136), region = 152  ;;  %s968_s6 = smov (!%p632_p11), 0  }
 0x126   : > { %s972_s20 = smov (!%p632_p11), 0  }
 0x12c LB: >> { %v453_v36 = vld [vmem:[%s966_s5] sm:$0xff]  ;;  %s455_s27 = sadd.s32 1, %s970_s6  ;;  %s447_s20 = sadd.s32 1, %s974_s20   ;;  %s974_s20 = sphi %s972_s20, %s447_s20   ;;  %s970_s6 = sphi %s968_s6, %s969_s6   ;;  %s966_s5 = sphi %s964_s5, %s460_s5   ;;  %s962_s30 = sphi %s960_s30, %s461_s30  }
 0x12d   : >> { %454 = vst [vmem:[%s962_s30] sm:$0xff] %v453_v36  ;;  %p456_p5 = scmp.ge.s32.totalorder %s455_s27, %s1196_s29  ;;  %p446_p8 = scmp.ge.s32.totalorder %s447_s20, %s1196_s29 }
 0x12f   : >> { %s1270_s27 = smov (%p456_p5, %s455_s27), 0  ;;  %449 = sbr.rel (!%p446_p8) target bundleno = 300 (0x12c), region = 158 }
 0x130   : >> { %s633_s7 = sshll.u32 %s1270_s27, 3  ;;  %s969_s6 = smov %s1270_s27  }
 0x131   : >> { %s460_s5 = scalar_lea.vmem %s441_s10, %s633_s7 [#allocation4]   ;;  %s461_s30 = scalar_lea.vmem %s443_s28, %s633_s7  }
 0x136 PF: > { %s17_s24 = sadd.s32 1, %s942_s24   ;;  %s1247_s11 = sld [smem:[#allocation6_spill]] }
 0x137   : > { %p14_p12 = scmp.ge.s32.totalorder %s17_s24, 6   ;;  %s1248_s15 = smov %s910_s16 }
 0x138   : > { %s1249_s16 = smov %s1091_s13  ;;  %s1250_s17 = smov %s918_s18 }
 0x139   : > { %s1251_s18 = smov %s922_s19  ;;  %s1252_s19 = smov %s1086_s12 }
 0x13a   : > { %s1253_s20 = smov %s934_s22  ;;  %s1254_s21 = smov %s938_s23 }
 0x13b   : > { %s1255_s22 = smov %s1258_s26  ;;  %16 = sbr.rel (!%p14_p12) target bundleno = 6 (0x6), region = 169 }
 0x13c   : > { %s1256_s23 = smov %s1247_s11 }
 0x142   :  { %477 = vsyncpa [#allocation3], 1 }
 0x143   :  { %479 = vsyncpa [#allocation3 + $0x1], 1 }

</bundles_post_ra>
